<compile_context>
chip_gen: v7x
topology: tpu7x:2x2x1
jax: 0.10.0
libtpu: 0.0.40
codegen_flags: <defaults>
</compile_context>

<pallas_src>
import jax
import jax.numpy as jnp
from jax.experimental import pallas as pl
from jax.experimental.pallas import tpu as pltpu


def head_kernel(x_ref, w1_ref, b1_ref, w2_ref, b2_ref, o_ref):
    # Linear 1 on the MXU: (TB, 2H) @ (2H, H), f32 accumulation.
    h = jnp.dot(x_ref[...], w1_ref[...], preferred_element_type=jnp.float32)
    # Bias (lane broadcast) + ReLU on the VPU.
    h = jnp.maximum(h + b1_ref[...], 0.0)
    # Linear 2 (H -> 1): VPU multiply + lane reduction, skips the MXU.
    out = jnp.sum(h * w2_ref[...], axis=-1) + b2_ref[0]          # (TB,)
    # Lane-dense store: the relayout to a (1, 1, TB) row is XLU work that is
    # free under the DMA-bound critical path and avoids 128x lane padding /
    # masked partial stores of a (TB, 1) column.
    o_ref[...] = out.reshape(1, 1, -1).astype(o_ref.dtype)


def _choose_tile_b(B, two_h, itemsize, tile_b):
    row_bytes = two_h * itemsize
    if tile_b is None:
        # Target ~4 MiB of x per grid step (>=85% of HBM roofline in measured
        # tiled-streaming data on every generation).
        tile_b = (4 * 1024 * 1024) // row_bytes
    # Multiple of 8 (f32 sublane), hard caps for sanity / VMEM.
    tile_b = max(8, min(32768, (int(tile_b) // 8) * 8))
    # Never let one x block exceed ~16 MiB even for very wide hidden sizes.
    tile_b = min(tile_b, max(8, (((16 << 20) // row_bytes) // 8) * 8))
    # Never larger than the (8-rounded) batch.
    b_padded = pl.cdiv(B, 8) * 8
    tile_b = min(tile_b, b_padded)
    # Keep >= 2 grid steps when the batch allows it so both v7x TensorCores
    # stay busy under dimension_semantics=("parallel",).
    if pl.cdiv(B, tile_b) < 2 and b_padded >= 16:
        tile_b = max(8, (pl.cdiv(b_padded, 2) // 8) * 8)
    return tile_b


def head_forward(x, w1, b1, w2, b2, *, tile_b=None):
    """Forward pass of Head.

    x:  (B, 2H) float32
    w1: (H, 2H), b1: (H,), w2: (1, H), b2: (1,)   (PyTorch nn.Linear layout)
    Returns (B, 1).
    """
    B, two_h = x.shape
    H = w1.shape[0]
    assert two_h == 2 * H

    itemsize = x.dtype.itemsize
    tile_b = _choose_tile_b(B, two_h, itemsize, tile_b)
    num_tiles = pl.cdiv(B, tile_b)

    # Pre-transpose to (in, out) so the kernel computes a plain x @ W.
    w1_t = jnp.transpose(w1)      # (2H, H)
    w2_row = w2.reshape(1, H)     # (1, H) broadcast row for the VPU reduce
    b1_2d = b1.reshape(1, H)      # (1, H)
    b2_1d = b2.reshape(1)         # (1,)  -> SMEM scalar

    # VMEM budget: double-buffered x blocks + double-buffered lane-dense out
    # rows (sublane-padded to 8) + weights, with slack.  Cap below v7x's
    # 64 MiB-per-TC physical VMEM.
    x_block_bytes = tile_b * two_h * itemsize
    out_block_bytes = 8 * tile_b * itemsize          # (1,1,TB) pads sublanes to 8
    weight_bytes = (two_h * H + 4 * H + 8) * 4 * 2
    budget = 2 * x_block_bytes + 2 * out_block_bytes + weight_bytes + (2 << 20)
    vmem_limit = int(min(48 << 20, max(16 << 20, budget)))

    # Advisory cost estimate (memory-bound; lets XLA schedule around the call).
    flops = 2 * B * two_h * H + 4 * B * H
    bytes_accessed = B * two_h * itemsize + B * itemsize + (two_h * H + 2 * H + 1) * 4
    cost = pl.CostEstimate(flops=flops, transcendentals=0,
                           bytes_accessed=bytes_accessed)

    const = lambda shape: pl.BlockSpec(shape, lambda i: (0, 0))

    out3 = pl.pallas_call(
        head_kernel,
        grid=(num_tiles,),
        in_specs=[
            pl.BlockSpec((tile_b, two_h), lambda i: (i, 0)),    # x: batch-tiled
            const((two_h, H)),                                  # w1 (resident)
            const((1, H)),                                      # b1 (resident)
            const((1, H)),                                      # w2 row (resident)
            pl.BlockSpec(memory_space=pltpu.MemorySpace.SMEM),  # b2 scalar
        ],
        out_specs=pl.BlockSpec((1, 1, tile_b), lambda i: (i, 0, 0)),
        out_shape=jax.ShapeDtypeStruct((num_tiles, 1, tile_b), x.dtype),
        compiler_params=pltpu.CompilerParams(
            dimension_semantics=("parallel",),
            vmem_limit_bytes=vmem_limit,
        ),
        cost_estimate=cost,
    )(x, w1_t, b1_2d, w2_row, b2_1d)

    # Lane-dense slab -> (B, 1).  Rows past B (partial last tile) are garbage
    # computed on out-of-bounds input rows and are sliced off here.
    return out3.reshape(num_tiles * tile_b)[:B].reshape(B, 1)


def init_head_params(key, hidden_size):
    """Deterministic init mimicking nn.Linear default (uniform +/- 1/sqrt(fan_in))."""
    k1, k2, k3, k4 = jax.random.split(key, 4)
    fan1 = 2 * hidden_size
    bound1 = 1.0 / (fan1 ** 0.5)
    w1 = jax.random.uniform(k1, (hidden_size, fan1), jnp.float32, -bound1, bound1)
    b1 = jax.random.uniform(k2, (hidden_size,), jnp.float32, -bound1, bound1)
    fan2 = hidden_size
    bound2 = 1.0 / (fan2 ** 0.5)
    w2 = jax.random.uniform(k3, (1, fan2), jnp.float32, -bound2, bound2)
    b2 = jax.random.uniform(k4, (1,), jnp.float32, -bound2, bound2)
    return w1, b1, w2, b2


if __name__ == "__main__":
    hidden_size = 32
    batch = 16

    key = jax.random.PRNGKey(0)
    kx, kp = jax.random.split(key)

    x = jax.random.normal(kx, (batch, 2 * hidden_size), jnp.float32)
    w1, b1, w2, b2 = init_head_params(kp, hidden_size)

    # At this demo size the tile logic clamps to tile_b=8 / grid=2, which
    # exercises the batch grid; production sizes get ~4 MiB x blocks per step.
    out = head_forward(x, w1, b1, w2, b2)
    out = jax.block_until_ready(out)

    # Reference check in plain JAX (same math as the PyTorch module).
    ref = jnp.maximum(x @ w1.T + b1, 0.0) @ w2.T + b2
    assert out.shape == (batch, 1)
    assert jnp.allclose(out, ref, atol=1e-5, rtol=1e-5)

    print("KERNEL_OK")
</pallas_src>

<mosaic_0001>
module attributes {stable_mosaic.version = 11 : i64} {
  func.func @head_kernel(%arg0: i32, %arg1: memref<8x64xf32, #tpu.memory_space<vmem>>, %arg2: memref<64x32xf32, #tpu.memory_space<vmem>>, %arg3: memref<1x32xf32, #tpu.memory_space<vmem>>, %arg4: memref<1x32xf32, #tpu.memory_space<vmem>>, %arg5: memref<1xf32, #tpu.memory_space<smem>>, %arg6: memref<1x1x8xf32, #tpu.memory_space<vmem>>) attributes {dimension_semantics = [#tpu.dimension_semantics<parallel>], iteration_bounds = array<i64: 2>, scalar_prefetch = 0 : i64, scratch_operands = 0 : i64, tpu.core_type = #tpu.core_type<tc>, window_params = [{transform_indices = @transform_0, window_bounds = array<i64: 8, 64>}, {pipeline_mode = #tpu.pipeline_mode<synchronous>, transform_indices = @transform_1, window_bounds = array<i64: 64, 32>}, {pipeline_mode = #tpu.pipeline_mode<synchronous>, transform_indices = @transform_2, window_bounds = array<i64: 1, 32>}, {pipeline_mode = #tpu.pipeline_mode<synchronous>, transform_indices = @transform_3, window_bounds = array<i64: 1, 32>}, {transform_indices = @transform_4, window_bounds = array<i64: 1>}, {transform_indices = @transform_5, window_bounds = array<i64: 1, 1, 8>}]} {
    %c0 = arith.constant 0 : index
    %c0_0 = arith.constant 0 : index
    %0 = vector.load %arg1[%c0, %c0_0] : memref<8x64xf32, #tpu.memory_space<vmem>>, vector<8x64xf32>
    %c0_1 = arith.constant 0 : index
    %c0_2 = arith.constant 0 : index
    %1 = vector.load %arg2[%c0_1, %c0_2] : memref<64x32xf32, #tpu.memory_space<vmem>>, vector<64x32xf32>
    %cst = arith.constant dense<0.000000e+00> : vector<8x32xf32>
    %2 = tpu.matmul %0, %1, %cst {dimension_numbers = #tpu.dot_dimension_numbers<[1], [0], [0], [1], [0, 0, 1, 1], [], []>} : vector<8x64xf32>, vector<64x32xf32>, vector<8x32xf32> -> vector<8x32xf32>
    %c0_3 = arith.constant 0 : index
    %c0_4 = arith.constant 0 : index
    %3 = vector.load %arg3[%c0_3, %c0_4] : memref<1x32xf32, #tpu.memory_space<vmem>>, vector<1x32xf32>
    %4 = vector.broadcast %3 : vector<1x32xf32> to vector<8x32xf32>
    %5 = arith.addf %2, %4 : vector<8x32xf32>
    %cst_5 = arith.constant 0.000000e+00 : f32
    %6 = vector.broadcast %cst_5 : f32 to vector<8x32xf32>
    %7 = arith.maximumf %5, %6 : vector<8x32xf32>
    %c0_6 = arith.constant 0 : index
    %c0_7 = arith.constant 0 : index
    %8 = vector.load %arg4[%c0_6, %c0_7] : memref<1x32xf32, #tpu.memory_space<vmem>>, vector<1x32xf32>
    %9 = vector.broadcast %8 : vector<1x32xf32> to vector<8x32xf32>
    %10 = arith.mulf %7, %9 : vector<8x32xf32>
    %cst_8 = arith.constant dense<0.000000e+00> : vector<8xf32>
    %11 = vector.multi_reduction <add>, %10, %cst_8 [1] : vector<8x32xf32> to vector<8xf32>
    %c0_9 = arith.constant 0 : index
    %12 = memref.load %arg5[%c0_9] : memref<1xf32, #tpu.memory_space<smem>>
    %13 = vector.broadcast %12 : f32 to vector<8xf32>
    %14 = arith.addf %11, %13 : vector<8xf32>
    %15 = vector.shape_cast %14 : vector<8xf32> to vector<1x1x8xf32>
    %c0_10 = arith.constant 0 : index
    %c0_11 = arith.constant 0 : index
    %c0_12 = arith.constant 0 : index
    %16 = vector.load %arg6[%c0_10, %c0_11, %c0_12] : memref<1x1x8xf32, #tpu.memory_space<vmem>>, vector<1x1x8xf32>
    tpu.vector_store %arg6[%c0_10, %c0_11, %c0_12], %15 {strides = array<i32>} : memref<1x1x8xf32, #tpu.memory_space<vmem>>, vector<1x1x8xf32>,
    return
  }
  func.func @transform_0(%arg0: i32) -> (i32, i32) {
    %c0_i32 = arith.constant 0 : i32
    %c0_i32_0 = arith.constant 0 : i32
    return %arg0, %c0_i32 : i32, i32
  }
  func.func @transform_1(%arg0: i32) -> (i32, i32) {
    %c0_i32 = arith.constant 0 : i32
    %c0_i32_0 = arith.constant 0 : i32
    %c0_i32_1 = arith.constant 0 : i32
    return %c0_i32, %c0_i32_0 : i32, i32
  }
  func.func @transform_2(%arg0: i32) -> (i32, i32) {
    %c0_i32 = arith.constant 0 : i32
    %c0_i32_0 = arith.constant 0 : i32
    %c0_i32_1 = arith.constant 0 : i32
    return %c0_i32, %c0_i32_0 : i32, i32
  }
  func.func @transform_3(%arg0: i32) -> (i32, i32) {
    %c0_i32 = arith.constant 0 : i32
    %c0_i32_0 = arith.constant 0 : i32
    %c0_i32_1 = arith.constant 0 : i32
    return %c0_i32, %c0_i32_0 : i32, i32
  }
  func.func @transform_4(%arg0: i32) -> i32 {
    %c0_i32 = arith.constant 0 : i32
    %c0_i32_0 = arith.constant 0 : i32
    return %c0_i32 : i32
  }
  func.func @transform_5(%arg0: i32) -> (i32, i32, i32) {
    %c0_i32 = arith.constant 0 : i32
    %c0_i32_0 = arith.constant 0 : i32
    %c0_i32_1 = arith.constant 0 : i32
    return %arg0, %c0_i32, %c0_i32_0 : i32, i32, i32
  }
}

</mosaic_0001>

<bundles_post_ra>
// kernel: tpu_custom_call.1
= control target key start
LH: loop header
LB: loop body
LE: loop exit
PB: predicated region body
PF: predicated region fallthrough
CT: control target
= control target key end

     0   :  { %s728_s0 = inlined_call_operand.vmem [shape: f32[16,64], index: 0, kind: input, shape index: {}]   ;;  %s729_s1 = inlined_call_operand.vmem [shape: f32[64,32], index: 1, kind: input, shape index: {}]   ;;  %s730_s2 = inlined_call_operand.vmem [shape: f32[1,32], index: 2, kind: input, shape index: {}]   ;;  %s731_s3 = inlined_call_operand.vmem [shape: f32[1,32], index: 3, kind: input, shape index: {}]   ;;  %s732_s4 = inlined_call_operand.<no memory space> [shape: f32[1], index: 4, kind: input, shape index: {}]   ;;  %s733_s5 = inlined_call_operand.hbm [shape: f32[2,1,8], index: 5, kind: output, shape index: {}]  }
   0x1   :  { %10 = sst [smem:[#allocation2]] %s732_s4 }
   0x2   :  { %11 = vsyncpa [#allocation4], 0 }
   0x3   :  { %13 = vsyncpa [#allocation4 + $0x1], 0  ;;  %s598_s20 = smov 0   ;;  %s600_s21 = smov 0  }
   0x4   :  { %s602_s22 = smov 0   ;;  %s604_s23 = smov 0  }
   0x5 LB: > { %s619_s4 = sadd.s32 4294967295, %s559_s23   ;;  %s404_s24 = sadd.s32 4294967294, %s559_s23   ;;  %s559_s23 = sphi %s604_s23, %s739_s23   ;;  %s555_s22 = sphi %s602_s22, %s738_s22   ;;  %s551_s21 = sphi %s600_s21, %s737_s21   ;;  %s547_s20 = sphi %s598_s20, %s736_s20  }
   0x6   : > { %s623_s25 = sadd.s32 1, %s559_s23   ;;  %s136_s26 = sadd.s32 1, %s555_s22 }
   0x7   : > { %s133_s27 = ssub.s32 %s559_s23, %s623_s25  ;;  %p146_p0 = scmp.ne.s32.totalorder %s555_s22, %s551_s21 }
   0x8   : > { %p134_p1 = scmp.eq.s32.totalorder %s133_s27, 0  ;;  %p147_p2 = scmp.eq.s32.totalorder %s619_s4, 1 }
   0x9   : > { %p152_p3 = scmp.ne.s32.totalorder %s551_s21, %s547_s20  ;;  %p153_p4 = scmp.eq.s32.totalorder %s404_s24, 1 }
   0xa   : > { %s634_s28 = scalar_select %p134_p1, %s555_s22, %s136_s26  }
   0xb   : > { %p636_p5 = por %p147_p2, %p146_p0  ;;  %p640_p6 = por %p153_p4, %p152_p3 }
   0xc   : > { %p407_p7 = scmp.ge.s32.totalorder %s559_s23, 1  ;;  %p190_p8 = scmp.lt.s32.totalorder %s559_s23, 3 }
   0xe   : > { %p191_p9 = pnand %p407_p7, %p190_p8 }
   0xf   : > { %v221_v0 = vld [vmem:[%s729_s1] sm:$0xff] (!%p191_p9)  ;;  %v222_v1 = vld [vmem:[%s729_s1 + $0x8] sm:$0xff] (!%p191_p9)  ;;  %v223_v2 = vld [vmem:[%s729_s1 + $0x10] sm:$0xff] (!%p191_p9)  ;;  %v561_v3 = vmov (!%p191_p9), 0.0|0.0   ;;  %vm562_vm0 = vmmov (!%p191_p9), 0   ;;  %v563_v6 = vmov (!%p191_p9), 0.0   ;;  %v327_v23 = vlaneseq (!%p191_p9) }
  0x10   : > { %194 = sbr.rel (%p191_p9) target bundleno = 412 (0x19c), region = 40  ;;  %443 = vmatprep.subr.bf16.mxu0 (!%p191_p9), %v561_v3  ;;  %v444_v4 = vpack.c.bf16 (!%p191_p9), %v222_v1, %v221_v0  ;;  %v224_v5 = vld [vmem:[%s729_s1 + $0x18] sm:$0xff] (!%p191_p9)  ;;  %440 = vmatprep.mubr.msk.f32.mxu0 (!%p191_p9), %vm562_vm0, %v563_v6  ;;  %p216_p10 = scmp.lt.s32.totalorder (!%p191_p9), %s619_s4, 1  ;;  %v225_v8 = vld [vmem:[%s729_s1 + $0x20] sm:$0xff] (!%p191_p9)  ;;  %v226_v9 = vld [vmem:[%s729_s1 + $0x28] sm:$0xff] (!%p191_p9)  ;;  %vm236_vm1 = vcmask (!%p191_p9), 523264  }
  0x11   : > { %v447_v7 = vpack.c.bf16 (!%p191_p9), %v224_v5, %v223_v2  ;;  %v450_v10 = vpack.c.bf16 (!%p191_p9), %v226_v9, %v225_v8  ;;  %v227_v11 = vld [vmem:[%s729_s1 + $0x30] sm:$0xff] (!%p191_p9)  ;;  %v228_v12 = vld [vmem:[%s729_s1 + $0x38] sm:$0xff] (!%p191_p9)  ;;  %v409_v15 = vld [vmem:[%s730_s2] ss:$0 sm:$0xff] (!%p191_p9)  ;;  %vm319_vm2 = vcmask (!%p191_p9), 261120   ;;  %s323_s14 = sld [smem:[#allocation2]] (!%p191_p9) }
  0x12   : > { %445 = vmatpush3.bf16.msra.mxu0 (!%p191_p9), %v444_v4  ;;  %v453_v13 = vpack.c.bf16 (!%p191_p9), %v228_v12, %v227_v11  ;;  %v411_v19 = vld [vmem:[%s731_s3] ss:$0 sm:$0xff] (!%p191_p9)  ;;  %s214_s15 = sand.u32 (!%p191_p9), 1, %s551_s21   ;;  %v328_v24 = vand.u32 (!%p191_p9), 127, %v327_v23  ;;  %v330_v25 = vshrl.u32 (!%p191_p9), %v327_v23, 7  ;;  %s412_s16 = sshll.u32 (!%p191_p9), %s619_s4, 4 }
  0x13   : > { %446 = vmatprep.subr.bf16.mxu0 (!%p191_p9), %v561_v3  ;;  %s215_s17 = scalar_lea.vmem (!%p191_p9), [#allocation3], %s214_s15  ;;  %vm334_vm3 = vcmask (!%p191_p9), 57344   ;;  %s686_s26 = scalar_lea.hbm (!%p191_p9), %s733_s5, %s412_s16 }
  0x14   : > { %v331_v27 = vsub.s32 (!%p191_p9), %v328_v24, %v330_v25  ;;  %s337_s27 = scalar_lea.sflag (!%p191_p9), [#allocation4], %s214_s15 }
  0x16   : > { %448 = vmatpush3.bf16.msra.mxu0 (!%p191_p9), %v447_v7 }
  0x17   : > { %s217_s18 = scalar_select %p216_p10, %s619_s4, 1  ;;  %449 = vmatprep.subr.bf16.mxu0 %v561_v3  ;;  %v324_v26 = vstv %s323_s14 }
  0x18   : > { %s564_s4 = smov [#allocation3]  }
  0x19   : > { %s408_s6 = sshll.u32 %s217_s18, 3  ;;  %s349_s18 = sshll.u32 %s215_s17, 4  ;;  %s688_s18 = int_to_ptr.vmem [resolvable:$true] %s349_s18 }
  0x1a   : > { %451 = vmatpush3.bf16.msra.mxu0 %v450_v10  ;;  %s219_s9 = scalar_lea.vmem %s728_s0, %s408_s6  ;;  %s497_s6 = scalar_lea.vmem %s688_s18, 16 }
  0x1b   : > { %452 = vmatprep.subr.bf16.mxu0 %v561_v3  ;;  %v220_v14 = vld [vmem:[%s219_s9] sm:$0xff]  ;;  %p498_p11 = scmp.ne.s32.totalorder %s688_s18, %s497_s6  ;;  %s501_s7 = sshll.u32 %s564_s4, 4  ;;  %s502_s7 = int_to_ptr.vmem [resolvable:$false] %s501_s7 }
  0x1c   : > { %s503_s8 = scalar_lea.vmem %s502_s7, 32  ;;  %p504_p0 = scmp.lt.s32.totalorder %s688_s18, %s502_s7 }
  0x1d   : > { %p499_p12 = pnand %p498_p11, %p636_p5  ;;  %p505_p1 = scmp.lt.s32.totalorder %s503_s8, %s497_s6 }
  0x1e   : > { %454 = vmatpush3.bf16.msra.mxu0 %v453_v13 }
  0x1f   : > { %p500_p13 = pneg %p499_p12  ;;  %p506_p2 = por %p505_p1, %p504_p0 }
  0x21   : > { %441 = vmatmul.mubr.msk.f32.vlgmr.msra.gmra.mrb[0].mxu0 %vm236_vm1, %v220_v14  ;;  %p507_p3 = pnand %p506_p2, %p500_p13 }
  0xf4   : > { %v306_v16 = vpop.f32.mrb[0].mxu0 }
  0xf5   : > { %v307_v17 = vadd.f32 %v409_v15, %v306_v16  ;;  %v442_v18 = vpop.f32.mrb[1].mxu0 }
  0xf7   : > { %v310_v20 = vmax.f32 %v307_v17, 0.0 }
  0xf9   : > { %v318_v21 = vmul.f32 %v411_v19, %v310_v20 }
  0xfb   : > { %v320_v22 = vsel %vm319_vm2, %v318_v21, 0.0 }
  0xfc   : > { %321 = vadd.xlane.f32.xlu0 %v320_v22 }
 0x189   : > { %v322_v28 = vpop.xlane.xlu0 %321 }
 0x18a   : > { %v325_v29 = vadd.f32 %v324_v26, %v322_v28 }
 0x18c   : > { %v332_v30 = vrot.slane %v325_v29, %v331_v27 }
 0x18e   : > { %335 = vst.msk [vmem:[%s215_s17] sm:$0x1] %vm334_vm3, %v332_v30 }
 0x18f   : > { %510 = shalt.err (!%p507_p3)
}
 0x190   : > { %s511_s9 = scalar_lea.hbm %s686_s26, 16  ;;  %s515_s12 = scalar_lea.hbm %s733_s5, 32 }
 0x191   : > { %p512_p4 = scmp.ne.s32.totalorder %s686_s26, %s511_s9  ;;  %p516_p9 = scmp.lt.u32.totalorder %s686_s26, %s733_s5 }
 0x192   : > { %p517_p10 = scmp.lt.u32.totalorder %s515_s12, %s511_s9  ;;  %p519_p12 = scmp.lt.u32.totalorder %s511_s9, %s686_s26 }
 0x193   : > { %p513_p7 = pnand %p512_p4, %p636_p5 }
 0x194   : > { %p518_p11 = por %p517_p10, %p516_p9 }
 0x195   : > { %p514_p8 = pneg %p513_p7 }
 0x196   : > { %p520_p13 = por %p519_p12, %p518_p11 }
 0x198   : > { %p521_p0 = pnand %p520_p13, %p514_p8 }
 0x19a   : > { %524 = shalt.err (!%p521_p0)
}
 0x19b   : > { %455 = dma.vmem_to_hbm [thread:$0]  (%p636_p5), %s688_s18, 16, %s686_s26, %s337_s27  }
 0x19c PF: > { %p461_p1 = scmp.ge.s32.totalorder %s559_s23, 2  ;;  %s361_s15 = sand.u32 1, %s547_s20  }
 0x19d   : > { %s362_s16 = scalar_lea.sflag [#allocation4], %s361_s15 }
 0x19e   : > { %p458_p2 = pnand %p461_p1, %p640_p6 }
 0x1a0   : > { %542 = dma.done.wait (!%p458_p2), %s362_s16, 16  }
 0x1a1   : > { %544 = vsyncadd (!%p458_p2), %s362_s16, 4294967280  ;;  %p16_p3 = scmp.ge.s32.totalorder %s623_s25, 4   ;;  %s736_s20 = smov %s551_s21 }
 0x1a2   : > { %s737_s21 = smov %s555_s22  ;;  %s738_s22 = smov %s634_s28 }
 0x1a3   : > { %s739_s23 = smov %s623_s25  ;;  %18 = sbr.rel (!%p16_p3) target bundleno = 5 (0x5), region = 75 }
 0x1aa   :  { %366 = vsyncpa [#allocation4], 1 }
 0x1ab   :  { %368 = vsyncpa [#allocation4 + $0x1], 1 }

</bundles_post_ra>
